<compile_context>
chip_gen: v7x
topology: tpu7x:2x2x1
jax: 0.10.0
libtpu: 0.0.40
codegen_flags: <defaults>
</compile_context>

<pallas_src>
import jax
import jax.numpy as jnp
from jax.experimental import pallas as pl
from jax.experimental.pallas import tpu as pltpu


def _round_up(x, m):
    return ((x + m - 1) // m) * m


# --------------------------------------------------------------------------- #
# Kernels
# --------------------------------------------------------------------------- #
def _mlp_resident_kernel(x_ref, w1t_ref, w2t_ref, o_ref):
    """Whole hidden dim per step; weights stay VMEM-resident across row tiles."""
    h = jnp.dot(x_ref[...], w1t_ref[...], preferred_element_type=jnp.float32)
    h = jnp.maximum(h, 0.0)
    o_ref[...] = jnp.dot(h.astype(w2t_ref.dtype), w2t_ref[...],
                         preferred_element_type=jnp.float32).astype(o_ref.dtype)


def _mlp_tiled_kernel_f32out(x_ref, w1t_ref, w2t_ref, o_ref):
    """(row tile, hidden tile) step; accumulate directly into the f32 output."""
    h_idx = pl.program_id(1)

    @pl.when(h_idx == 0)
    def _init():
        o_ref[...] = jnp.zeros_like(o_ref)

    h = jnp.dot(x_ref[...], w1t_ref[...], preferred_element_type=jnp.float32)
    h = jnp.maximum(h, 0.0)
    o_ref[...] += jnp.dot(h.astype(w2t_ref.dtype), w2t_ref[...],
                          preferred_element_type=jnp.float32)


def _mlp_tiled_kernel_scratch(x_ref, w1t_ref, w2t_ref, o_ref, acc_ref):
    """Same as above, but with an f32 scratch accumulator (non-f32 outputs)."""
    h_idx = pl.program_id(1)

    @pl.when(h_idx == 0)
    def _init():
        acc_ref[...] = jnp.zeros_like(acc_ref)

    h = jnp.dot(x_ref[...], w1t_ref[...], preferred_element_type=jnp.float32)
    h = jnp.maximum(h, 0.0)
    acc_ref[...] += jnp.dot(h.astype(w2t_ref.dtype), w2t_ref[...],
                            preferred_element_type=jnp.float32)

    @pl.when(h_idx == pl.num_programs(1) - 1)
    def _finalize():
        o_ref[...] = acc_ref[...].astype(o_ref.dtype)


# --------------------------------------------------------------------------- #
# Weight preparation (once, at weight-load time — NOT per forward call)
# --------------------------------------------------------------------------- #
def make_mlp_params(w1, w2, dtype=None):
    """Transpose from the PyTorch (out_features, in_features) layout, optionally
    cast (jnp.bfloat16 recommended: halves HBM/VMEM traffic, full MXU rate),
    pad hidden to a multiple of 256 (when tiled) and output to a multiple of
    128 (lane-dense unmasked stores).  Returns (w1t, w2t, out_dim)."""
    w1t = jnp.asarray(w1).T            # (D, H)
    w2t = jnp.asarray(w2).T            # (H, O)
    if dtype is not None:
        w1t = w1t.astype(dtype)
        w2t = w2t.astype(dtype)
    H = w1t.shape[1]
    O = w2t.shape[1]

    Hp = _round_up(H, 256) if H > 256 else H   # small H: full-dim block is legal
    Op = _round_up(O, 128)
    if Hp != H:
        w1t = jnp.pad(w1t, ((0, 0), (0, Hp - H)))
        w2t = jnp.pad(w2t, ((0, Hp - H), (0, 0)))
    if Op != O:
        w2t = jnp.pad(w2t, ((0, 0), (0, Op - O)))
    return w1t, w2t, O


# --------------------------------------------------------------------------- #
# Launcher
# --------------------------------------------------------------------------- #
def mlp_pallas(x2d, w1t, w2t, *, force_tiled=False, tm=None, th=None):
    """x2d: (M, D); w1t: (D, Hp); w2t: (Hp, Op). Returns (M, Op)."""
    M, D = x2d.shape
    Hp = w1t.shape[1]
    Op = w2t.shape[1]
    out_dtype = x2d.dtype

    # VMEM budget (per TensorCore): 128 MiB on v5e/v6e, 64 MiB on v7x.
    try:
        phys = int(pltpu.get_tpu_info().vmem_capacity_bytes)
    except Exception:
        phys = 64 << 20
    vmem_limit = max(32 << 20, min(phys - (16 << 20), 112 << 20))
    budget = vmem_limit - (4 << 20)

    xb = x2d.dtype.itemsize
    wb = w1t.dtype.itemsize
    ob = jnp.dtype(out_dtype).itemsize
    weight_bytes = w1t.size * w1t.dtype.itemsize + w2t.size * w2t.dtype.itemsize

    small_vmem = phys <= (96 << 20)                      # v7x-class
    tm_pref = tm if tm is not None else (256 if small_vmem else 512)
    th_pref = th if th is not None else (512 if small_vmem else 1024)

    def pick_tm(pref):
        if M <= pref:
            return _round_up(max(M, 8), 8)               # single / few row tiles
        return max(256, (pref // 256) * 256)             # multiple of 256 (MXU)

    # ------------------ resident-weights path ------------------ #
    tm_res = pick_tm(tm_pref)
    resident_footprint = (2 * weight_bytes                # conservatively double-buffered
                          + 2 * tm_res * D * xb
                          + 2 * tm_res * Op * ob)
    use_resident = (not force_tiled) and resident_footprint <= budget

    if use_resident:
        tm_sel = tm_res
        Mp = _round_up(M, tm_sel)
        xp = jnp.pad(x2d, ((0, Mp - M), (0, 0))) if Mp != M else x2d
        grid = (Mp // tm_sel,)
        flops = 2 * Mp * Hp * (D + Op)
        bytes_accessed = Mp * D * xb + weight_bytes + Mp * Op * ob   # weights once

        out = pl.pallas_call(
            _mlp_resident_kernel,
            out_shape=jax.ShapeDtypeStruct((Mp, Op), out_dtype),
            grid_spec=pltpu.PrefetchScalarGridSpec(
                num_scalar_prefetch=0,
                grid=grid,
                in_specs=[
                    pl.BlockSpec((tm_sel, D), lambda i: (i, 0)),
                    pl.BlockSpec((D, Hp), lambda i: (0, 0)),   # constant index map:
                    pl.BlockSpec((Hp, Op), lambda i: (0, 0)),  # weights DMA'd once
                ],
                out_specs=pl.BlockSpec((tm_sel, Op), lambda i: (i, 0)),
            ),
            compiler_params=pltpu.CompilerParams(
                dimension_semantics=("parallel",),
                vmem_limit_bytes=vmem_limit),
            cost_estimate=pl.CostEstimate(flops=flops, transcendentals=0,
                                          bytes_accessed=bytes_accessed),
        )(xp, w1t, w2t)
        return out[:M] if Mp != M else out

    # ------------------ tiled (large hidden) path ------------------ #
    tm_sel = pick_tm(tm_pref)
    use_scratch = out_dtype != jnp.float32

    def footprint(t_m, t_h):
        f = (2 * t_m * D * xb + 2 * D * t_h * wb
             + 2 * t_h * Op * wb + 2 * t_m * Op * ob)
        if use_scratch:
            f += t_m * Op * 4
        return f

    th_candidates = [c for c in (4096, 2048, 1024, 512, 256)
                     if c <= Hp and Hp % c == 0]
    if not th_candidates:
        th_candidates = [Hp]
    th_sel = None
    for cand in th_candidates:
        if cand <= th_pref and footprint(tm_sel, cand) <= budget:
            th_sel = cand
            break
    if th_sel is None:
        th_sel = th_candidates[-1]
    while footprint(tm_sel, th_sel) > budget and tm_sel > 256:
        tm_sel = max(256, tm_sel - 256)
    # TODO(synk): if even (tm=256, th=min) exceeds the VMEM budget (gigantic O),
    # add an output-column grid axis; not needed for these shapes.

    Mp = _round_up(M, tm_sel)
    xp = jnp.pad(x2d, ((0, Mp - M), (0, 0))) if Mp != M else x2d
    grid = (Mp // tm_sel, Hp // th_sel)

    flops = 2 * Mp * Hp * (D + Op)
    # Weights are re-streamed once per row tile with this grid.
    bytes_accessed = Mp * D * xb + (Mp // tm_sel) * weight_bytes + Mp * Op * ob

    kernel = _mlp_tiled_kernel_scratch if use_scratch else _mlp_tiled_kernel_f32out
    scratch = [pltpu.VMEM((tm_sel, Op), jnp.float32)] if use_scratch else []

    out = pl.pallas_call(
        kernel,
        out_shape=jax.ShapeDtypeStruct((Mp, Op), out_dtype),
        grid_spec=pltpu.PrefetchScalarGridSpec(
            num_scalar_prefetch=0,
            grid=grid,
            in_specs=[
                pl.BlockSpec((tm_sel, D), lambda i, h: (i, 0)),
                pl.BlockSpec((D, th_sel), lambda i, h: (0, h)),
                pl.BlockSpec((th_sel, Op), lambda i, h: (h, 0)),
            ],
            out_specs=pl.BlockSpec((tm_sel, Op), lambda i, h: (i, 0)),
            scratch_shapes=scratch,
        ),
        compiler_params=pltpu.CompilerParams(
            dimension_semantics=("parallel", "arbitrary"),
            vmem_limit_bytes=vmem_limit),
        cost_estimate=pl.CostEstimate(flops=flops, transcendentals=0,
                                      bytes_accessed=bytes_accessed),
    )(xp, w1t, w2t)
    return out[:M] if Mp != M else out


def mlp_forward(x, w1t, w2t, out_dim, *, force_tiled=False, tm=None, th=None):
    """x: (batch, seq, d_model); (w1t, w2t, out_dim) from make_mlp_params."""
    B, S, D = x.shape
    out2d = mlp_pallas(x.reshape(B * S, D), w1t, w2t,
                       force_tiled=force_tiled, tm=tm, th=th)
    return out2d[:, :out_dim].reshape(B, S, out_dim)


if __name__ == "__main__":
    # --- small shapes implied by the forward (resident-weights path, f32) ---
    batch, seq = 2, 8
    d_model, hidden_dim, output_dim = 32, 64, 32

    key = jax.random.PRNGKey(0)
    kx, k1, k2 = jax.random.split(key, 3)

    x = jax.random.normal(kx, (batch, seq, d_model), dtype=jnp.float32)
    # PyTorch nn.Linear weight layout: (out_features, in_features).
    w1 = jax.random.normal(k1, (hidden_dim, d_model), dtype=jnp.float32) * (d_model ** -0.5)
    w2 = jax.random.normal(k2, (output_dim, hidden_dim), dtype=jnp.float32) * (hidden_dim ** -0.5)

    w1t, w2t, o_dim = make_mlp_params(w1, w2)        # once, at weight-load time
    out = jax.block_until_ready(mlp_forward(x, w1t, w2t, o_dim))
    ref = jnp.maximum(x @ w1.T, 0.0) @ w2.T
    assert out.shape == (batch, seq, output_dim)
    assert jnp.allclose(out, ref, atol=1e-4, rtol=1e-4), "mismatch (resident, f32)"

    # --- medium shapes, bf16 weights/activations, forced TILED path ---
    # (exercises the reduction grid axis, ragged-M padding, multi hidden tiles,
    #  H padded 640->768, O padded 96->128 lane-dense)
    b2, s2, d2, h2, o2 = 4, 100, 128, 640, 96
    kx2, k12, k22 = jax.random.split(jax.random.PRNGKey(1), 3)
    x2 = jax.random.normal(kx2, (b2, s2, d2), dtype=jnp.float32)
    w1b = jax.random.normal(k12, (h2, d2), dtype=jnp.float32) * (d2 ** -0.5)
    w2b = jax.random.normal(k22, (o2, h2), dtype=jnp.float32) * (h2 ** -0.5)

    w1bt, w2bt, o2_dim = make_mlp_params(w1b, w2b, dtype=jnp.bfloat16)
    ref2 = jnp.maximum(x2 @ w1b.T, 0.0) @ w2b.T

    out2 = jax.block_until_ready(
        mlp_forward(x2.astype(jnp.bfloat16), w1bt, w2bt, o2_dim, force_tiled=True))
    assert out2.shape == (b2, s2, o2)
    err2 = jnp.max(jnp.abs(out2.astype(jnp.float32) - ref2))
    assert err2 < 0.2, f"mismatch (tiled, bf16): max abs err {err2}"

    # --- same weights via the resident path (bf16) ---
    out3 = jax.block_until_ready(
        mlp_forward(x2.astype(jnp.bfloat16), w1bt, w2bt, o2_dim))
    err3 = jnp.max(jnp.abs(out3.astype(jnp.float32) - ref2))
    assert err3 < 0.2, f"mismatch (resident, bf16): max abs err {err3}"

    print("KERNEL_OK")
</pallas_src>

<mosaic_0001>
module attributes {stable_mosaic.version = 11 : i64} {
  func.func @_mlp_resident_kernel(%arg0: i32, %arg1: memref<16x32xf32, #tpu.memory_space<vmem>>, %arg2: memref<32x64xf32, #tpu.memory_space<vmem>>, %arg3: memref<64x128xf32, #tpu.memory_space<vmem>>, %arg4: memref<16x128xf32, #tpu.memory_space<vmem>>) attributes {dimension_semantics = [#tpu.dimension_semantics<parallel>], iteration_bounds = array<i64: 1>, scalar_prefetch = 0 : i64, scratch_operands = 0 : i64, tpu.core_type = #tpu.core_type<tc>, window_params = [{transform_indices = @transform_0, window_bounds = array<i64: 16, 32>}, {pipeline_mode = #tpu.pipeline_mode<synchronous>, transform_indices = @transform_1, window_bounds = array<i64: 32, 64>}, {pipeline_mode = #tpu.pipeline_mode<synchronous>, transform_indices = @transform_2, window_bounds = array<i64: 64, 128>}, {transform_indices = @transform_3, window_bounds = array<i64: 16, 128>}]} {
    %c0 = arith.constant 0 : index
    %c0_0 = arith.constant 0 : index
    %0 = vector.load %arg1[%c0, %c0_0] : memref<16x32xf32, #tpu.memory_space<vmem>>, vector<16x32xf32>
    %c0_1 = arith.constant 0 : index
    %c0_2 = arith.constant 0 : index
    %1 = vector.load %arg2[%c0_1, %c0_2] : memref<32x64xf32, #tpu.memory_space<vmem>>, vector<32x64xf32>
    %cst = arith.constant dense<0.000000e+00> : vector<16x64xf32>
    %2 = tpu.matmul %0, %1, %cst {dimension_numbers = #tpu.dot_dimension_numbers<[1], [0], [0], [1], [0, 0, 1, 1], [], []>} : vector<16x32xf32>, vector<32x64xf32>, vector<16x64xf32> -> vector<16x64xf32>
    %cst_3 = arith.constant 0.000000e+00 : f32
    %3 = vector.broadcast %cst_3 : f32 to vector<16x64xf32>
    %4 = arith.maximumf %2, %3 : vector<16x64xf32>
    %c0_4 = arith.constant 0 : index
    %c0_5 = arith.constant 0 : index
    %5 = vector.load %arg3[%c0_4, %c0_5] : memref<64x128xf32, #tpu.memory_space<vmem>>, vector<64x128xf32>
    %cst_6 = arith.constant dense<0.000000e+00> : vector<16x128xf32>
    %6 = tpu.matmul %4, %5, %cst_6 {dimension_numbers = #tpu.dot_dimension_numbers<[1], [0], [0], [1], [0, 0, 1, 1], [], []>} : vector<16x64xf32>, vector<64x128xf32>, vector<16x128xf32> -> vector<16x128xf32>
    %c0_7 = arith.constant 0 : index
    %c0_8 = arith.constant 0 : index
    %7 = vector.load %arg4[%c0_7, %c0_8] : memref<16x128xf32, #tpu.memory_space<vmem>>, vector<16x128xf32>
    tpu.vector_store %arg4[%c0_7, %c0_8], %6 {strides = array<i32>} : memref<16x128xf32, #tpu.memory_space<vmem>>, vector<16x128xf32>,
    return
  }
  func.func @transform_0(%arg0: i32) -> (i32, i32) {
    %c0_i32 = arith.constant 0 : i32
    %c0_i32_0 = arith.constant 0 : i32
    return %arg0, %c0_i32 : i32, i32
  }
  func.func @transform_1(%arg0: i32) -> (i32, i32) {
    %c0_i32 = arith.constant 0 : i32
    %c0_i32_0 = arith.constant 0 : i32
    %c0_i32_1 = arith.constant 0 : i32
    return %c0_i32, %c0_i32_0 : i32, i32
  }
  func.func @transform_2(%arg0: i32) -> (i32, i32) {
    %c0_i32 = arith.constant 0 : i32
    %c0_i32_0 = arith.constant 0 : i32
    %c0_i32_1 = arith.constant 0 : i32
    return %c0_i32, %c0_i32_0 : i32, i32
  }
  func.func @transform_3(%arg0: i32) -> (i32, i32) {
    %c0_i32 = arith.constant 0 : i32
    %c0_i32_0 = arith.constant 0 : i32
    return %arg0, %c0_i32 : i32, i32
  }
}

</mosaic_0001>

<bundles_post_ra>
// kernel: tpu_custom_call.1
= control target key start
LH: loop header
LB: loop body
LE: loop exit
PB: predicated region body
PF: predicated region fallthrough
CT: control target
= control target key end

     0   :  { %8 = vsyncpa [#allocation3], 0  ;;  %s525_s0 = inlined_call_operand.hbm [shape: f32[16,32], index: 0, kind: input, shape index: {}]   ;;  %s526_s1 = inlined_call_operand.hbm [shape: f32[32,64], index: 1, kind: input, shape index: {}]   ;;  %s527_s2 = inlined_call_operand.hbm [shape: f32[64,128], index: 2, kind: input, shape index: {}]   ;;  %s528_s3 = inlined_call_operand.hbm [shape: f32[16,128], index: 3, kind: output, shape index: {}]  }
   0x1   :  { %9 = vsyncpa [#allocation6], 0 }
   0x2   :  { %10 = vsyncpa [#allocation4], 0  ;;  %s430_s12 = smov [#allocation5]   ;;  %s431_s14 = smov [#allocation2]  }
   0x3   :  { %s28_s13 = sshll.u32 %s430_s12, 4  ;;  %s16_s15 = sshll.u32 %s431_s14, 4  ;;  %s29_s13 = int_to_ptr.vmem [resolvable:$true] %s28_s13  ;;  %s456_s15 = int_to_ptr.vmem [resolvable:$true] %s16_s15 }
   0x4   :  { %s336_s18 = scalar_lea.hbm %s526_s1, 512 }
   0x5   :  { %p337_p0 = scmp.ne.s32.totalorder %s526_s1, %s336_s18  ;;  %p340_p1 = scmp.lt.u32.totalorder %s336_s18, %s526_s1 }
   0x7   :  { %p342_p2 = pnand %p340_p1, %p337_p0 }
   0x9   :  { %345 = shalt.err (!%p342_p2)
}
   0xa   :  { %s346_s23 = scalar_lea.vmem %s29_s13, 512  ;;  %p351_p4 = scmp.lt.s32.totalorder %s29_s13, %s29_s13 }
   0xb   :  { %p347_p3 = scmp.ne.s32.totalorder %s29_s13, %s346_s23  ;;  %p352_p5 = scmp.lt.s32.totalorder %s346_s23, %s346_s23 }
   0xd   :  { %p353_p6 = por %p352_p5, %p351_p4 }
   0xf   :  { %p354_p7 = pnand %p353_p6, %p347_p3 }
  0x11   :  { %357 = shalt.err (!%p354_p7)
}
  0x12   :  { %s432_s24 = smov 128   ;;  %s433_s25 = smov 8  }
  0x13   :  { %34 = dma.hbm_to_vmem [thread:$0]  %s526_s1, 512, %s29_s13, [#allocation6], %s432_s24, %s432_s24, %s433_s25  }
  0x14   :  { %s358_s30 = scalar_lea.hbm %s525_s0, 256 }
  0x15   :  { %p359_p8 = scmp.ne.s32.totalorder %s525_s0, %s358_s30  ;;  %p362_p9 = scmp.lt.u32.totalorder %s358_s30, %s525_s0 }
  0x17   :  { %p364_p10 = pnand %p362_p9, %p359_p8 }
  0x19   :  { %367 = shalt.err (!%p364_p10)
}
  0x1a   :  { %s368_s8 = scalar_lea.vmem %s456_s15, 256  ;;  %p373_p12 = scmp.lt.s32.totalorder %s456_s15, %s456_s15 }
  0x1b   :  { %p369_p11 = scmp.ne.s32.totalorder %s456_s15, %s368_s8  ;;  %p374_p13 = scmp.lt.s32.totalorder %s368_s8, %s368_s8 }
  0x1d   :  { %p375_p0 = por %p374_p13, %p373_p12 }
  0x1f   :  { %p376_p1 = pnand %p375_p0, %p369_p11 }
  0x21   :  { %379 = shalt.err (!%p376_p1)
}
  0x22   :  { %22 = dma.hbm_to_vmem [thread:$0]  %s525_s0, 256, %s456_s15, [#allocation3], %s432_s24, %s432_s24, %s433_s25  }
  0x23   :  { %s434_s10 = smov [#allocation7]   ;;  %s380_s14 = scalar_lea.hbm %s527_s2, 1024 }
  0x24   :  { %s40_s11 = sshll.u32 %s434_s10, 4  ;;  %p381_p2 = scmp.ne.s32.totalorder %s527_s2, %s380_s14  ;;  %s41_s11 = int_to_ptr.vmem [resolvable:$true] %s40_s11 }
  0x25   :  { %p384_p3 = scmp.lt.u32.totalorder %s380_s14, %s527_s2 }
  0x27   :  { %p386_p4 = pnand %p384_p3, %p381_p2 }
  0x29   :  { %389 = shalt.err (!%p386_p4)
}
  0x2a   :  { %s390_s20 = scalar_lea.vmem %s41_s11, 1024  ;;  %p395_p6 = scmp.lt.s32.totalorder %s41_s11, %s41_s11 }
  0x2b   :  { %p391_p5 = scmp.ne.s32.totalorder %s41_s11, %s390_s20  ;;  %p396_p7 = scmp.lt.s32.totalorder %s390_s20, %s390_s20 }
  0x2d   :  { %p397_p8 = por %p396_p7, %p395_p6 }
  0x2f   :  { %p398_p9 = pnand %p397_p8, %p391_p5 }
  0x31   :  { %401 = shalt.err (!%p398_p9)
}
  0x32   :  { %46 = dma.hbm_to_vmem [thread:$0]  %s527_s2, 1024, %s41_s11, [#allocation6], %s432_s24, %s432_s24, %s433_s25  }
  0x33   :  { %424 = dma.done.wait [#allocation3], 256  }
  0x34   :  { %425 = vsyncadd [#allocation3], 4294967040 }
  0x35   :  { %426 = dma.done.wait [#allocation6], 1536  }
  0x36   :  { %427 = vsyncadd [#allocation6], 4294965760  ;;  %vm62_vm0 = vcmask 261120   ;;  %v58_v0 = vld [vmem:[#allocation5] sm:$0xff]  ;;  %v59_v1 = vld [vmem:[#allocation5 + $0x8] sm:$0xff]  ;;  %vm154_vm1 = vcmask 523264  }
  0x37   :  { %v60_v2 = vld [vmem:[#allocation5 + $0x10] sm:$0xff]  ;;  %v306_v3 = vpack.c.bf16 %v59_v1, %v58_v0  ;;  %v61_v4 = vld [vmem:[#allocation5 + $0x18] sm:$0xff]  ;;  %v146_v7 = vld [vmem:[#allocation7] sm:$0xff]  ;;  %s435_s2 = smov [#allocation8]  }
  0x38   :  { %v56_v5 = vld [vmem:[#allocation2] sm:$0xff]  ;;  %v310_v6 = vpack.c.bf16 %v61_v4, %v60_v2  ;;  %v147_v8 = vld [vmem:[#allocation7 + $0x8] sm:$0xff]  ;;  %v149_v11 = vld [vmem:[#allocation7 + $0x18] sm:$0xff]  ;;  %s243_s21 = sshll.u32 %s435_s2, 4  ;;  %s244_s21 = int_to_ptr.vmem [resolvable:$true] %s243_s21 }
  0x39   :  { %284 = vmatprep.mubr.msk.f32.mxu0 %vm62_vm0, %v56_v5  ;;  %v148_v9 = vld [vmem:[#allocation7 + $0x10] sm:$0xff]  ;;  %307 = vmatprep.subr.bf16.mxu0 %v306_v3  ;;  %v314_v10 = vpack.c.bf16 %v147_v8, %v146_v7  ;;  %v150_v13 = vld [vmem:[#allocation7 + $0x20] sm:$0xff]  ;;  %v151_v14 = vld [vmem:[#allocation7 + $0x28] sm:$0xff]  ;;  %s402_s22 = scalar_lea.vmem %s244_s21, 256  ;;  %p407_p11 = scmp.lt.s32.totalorder %s244_s21, %s244_s21 }
  0x3a   :  { %309 = vmatpush3.bf16.msra.mxu0 %v306_v3  ;;  %v318_v12 = vpack.c.bf16 %v149_v11, %v148_v9  ;;  %v322_v15 = vpack.c.bf16 %v151_v14, %v150_v13  ;;  %v57_v16 = vld [vmem:[#allocation2 + $0x8] sm:$0xff]  ;;  %v152_v17 = vld [vmem:[#allocation7 + $0x30] sm:$0xff]  ;;  %p403_p10 = scmp.ne.s32.totalorder %s244_s21, %s402_s22  ;;  %p408_p12 = scmp.lt.s32.totalorder %s402_s22, %s402_s22 }
  0x3b   :  { %311 = vmatprep.subr.bf16.mxu0 %v310_v6  ;;  %315 = vmatprep.subr.bf16.mxu1 %v314_v10  ;;  %v153_v18 = vld [vmem:[#allocation7 + $0x38] sm:$0xff] }
  0x3c   :  { %317 = vmatpush3.bf16.msra.mxu1 %v314_v10  ;;  %v326_v19 = vpack.c.bf16 %v153_v18, %v152_v17  ;;  %p409_p13 = por %p408_p12, %p407_p11 }
  0x3d   :  { %319 = vmatprep.subr.bf16.mxu1 %v318_v12 }
  0x3e   :  { %313 = vmatpush3.bf16.msra.mxu0 %v310_v6  ;;  %p410_p0 = pnand %p409_p13, %p403_p10 }
  0x40   :  { %321 = vmatpush3.bf16.msra.mxu1 %v318_v12 }
  0x41   :  { %285 = vmatmul.mubr.msk.f32.vlgmr.msra.gmra.mrb[0].mxu0 %vm62_vm0, %v57_v16  ;;  %323 = vmatprep.subr.bf16.mxu1 %v322_v15 }
  0x44   :  { %325 = vmatpush3.bf16.msra.mxu1 %v322_v15 }
  0x45   :  { %327 = vmatprep.subr.bf16.mxu1 %v326_v19 }
  0x48   :  { %329 = vmatpush3.bf16.msra.mxu1 %v326_v19 }
 0x114   :  { %v286_v20 = vpop.f32.mrb[0].mxu0 }
 0x115   :  { %v135_v21 = vpop.f32.mrb[1].mxu0  ;;  %v145_v23 = vmax.f32 %v286_v20, 0.0 }
 0x116   :  { %v144_v22 = vmax.f32 %v135_v21, 0.0 }
 0x118   :  { %303 = vmatprep.mubr.msk.f32.mxu1 %vm154_vm1, %v144_v22 }
 0x119   :  { %304 = vmatmul.mubr.msk.f32.vlgmr.msra.gmra.mrb[0].mxu1 %vm154_vm1, %v145_v23 }
 0x1ec   :  { %v305_v24 = vpop.f32.mrb[0].mxu1 }
 0x1ed   :  { %237 = vst [vmem:[#allocation8 + $0x8] sm:$0xff] %v305_v24  ;;  %v227_v25 = vpop.f32.mrb[1].mxu1 }
 0x1ee   :  { %236 = vst [vmem:[#allocation8] sm:$0xff] %v227_v25 }
 0x1ef   :  { %413 = shalt.err (!%p410_p0)
}
 0x1f0   :  { %s414_s27 = scalar_lea.hbm %s528_s3, 256 }
 0x1f1   :  { %p415_p1 = scmp.ne.s32.totalorder %s528_s3, %s414_s27  ;;  %p418_p2 = scmp.lt.u32.totalorder %s414_s27, %s528_s3 }
 0x1f3   :  { %p420_p3 = pnand %p418_p2, %p415_p1 }
 0x1f5   :  { %423 = shalt.err (!%p420_p3)
}
 0x1f6   :  { %249 = dma.vmem_to_hbm [thread:$0]  %s244_s21, 256, %s528_s3, [#allocation4], %s432_s24, %s432_s24, %s433_s25  }
 0x1f7   :  { %428 = dma.done.wait [#allocation4], 256  }
 0x1f8   :  { %429 = vsyncadd [#allocation4], 4294967040 }
 0x1f9   :  { %253 = vsyncpa [#allocation3], 1 }
 0x1fa   :  { %254 = vsyncpa [#allocation6], 1 }
 0x1fb   :  { %255 = vsyncpa [#allocation4], 1 }

</bundles_post_ra>
